<compile_context>
chip_gen: v5e
topology: v5e:2x2
jax: 0.10.0
libtpu: 0.0.40
codegen_flags: <defaults>
</compile_context>

<pallas_src>
import jax
import jax.numpy as jnp
from jax.experimental import pallas as pl
from jax.experimental.pallas import tpu as pltpu

# Small synthetic sizes consistent with the module's forward pass.
B, S, H = 2, 8, 32                 # batch, sequence length, hidden_size
VOCAB = 50
ANS_CLASS, PROP_LABEL, ENTITY_CLASS = 4, 6, 3
NUM_HEADS = 3                       # ans / prop / entity attention heads
OUT_PAD = 128                       # lane-dense packed logit width
LN_EPS = 1e-5


def _fused_kernel(ids_ref, x_ref, head_ref, cls_ref, out_ref):
    """Whole batch in one grid step.

    ids_ref : (B, S) int32
    x_ref   : (B*S, H) f32       encoder last_hidden_state (rows flattened)
    head_ref: (2+2K, H) f32      [ln_g; ln_b; att_w (K,H); att_b in col 0]
    cls_ref : (H+1+K, OUT_PAD)   [column-packed W; concat bias; K select masks]
    out_ref : (B, OUT_PAD)       packed logits (ans | sigmoid(prop) | entity | 0...)
    """
    _, hid = x_ref.shape
    b_rows, seq = ids_ref.shape
    k_heads = NUM_HEADS

    x = x_ref[...].astype(jnp.float32)                     # (B*S, H)
    ids = ids_ref[...]                                     # (B, S)

    ln_g = head_ref[0:1, :]                                # (1, H)
    ln_b = head_ref[1:2, :]                                # (1, H)
    att_w = head_ref[2:2 + k_heads, :]                     # (K, H)
    att_b = head_ref[2 + k_heads:2 + 2 * k_heads, 0:1]     # (K, 1)

    # ---- LayerNorm over hidden (lane) axis, eps matches nn.LayerNorm ----
    mean = jnp.mean(x, axis=-1, keepdims=True)
    ctr = x - mean
    var = jnp.mean(ctr * ctr, axis=-1, keepdims=True)
    xn = ctr * jax.lax.rsqrt(var + LN_EPS)
    xn = xn * ln_g + ln_b                                  # (B*S, H)
    # dropout(p=0.1) is identity in eval mode.

    # ---- all heads x all rows in ONE MXU push: (K,H)@(B*S,H)^T -> (K,B*S) ----
    scores_all = jax.lax.dot_general(
        att_w, xn, (((1,), (1,)), ((), ())),
        preferred_element_type=jnp.float32)
    scores_all = scores_all + att_b                        # Linear(H,1) bias

    pad = ids == 0                                         # (B, S) padding mask

    # ---- per-row masked softmax + pooling (static unroll over tiny B) ----
    pooled_rows = []
    for b in range(b_rows):
        sb = scores_all[:, b * seq:(b + 1) * seq]          # (K, S)
        sb = jnp.where(pad[b:b + 1, :], jnp.float32(-1e9), sb)
        m = jnp.max(sb, axis=-1, keepdims=True)
        e = jnp.exp(sb - m)
        p = e / jnp.sum(e, axis=-1, keepdims=True)         # exact division
        xb = xn[b * seq:(b + 1) * seq, :]                  # (S, H)
        pooled_rows.append(
            jnp.dot(p, xb, preferred_element_type=jnp.float32))  # (K, H)
    pooled_all = jnp.concatenate(pooled_rows, axis=0)      # (B*K, H)

    # ---- 3 classifiers x all rows fused: ONE (B*K,H)@(H,128) matmul, then
    #      each head keeps only its own column block via a 0/1 select mask ----
    w_full = cls_ref[:hid, :]                              # (H, OUT_PAD)
    bias = cls_ref[hid:hid + 1, :]                         # (1, OUT_PAD)
    sel = cls_ref[hid + 1:hid + 1 + k_heads, :]            # (K, OUT_PAD)
    full = jnp.dot(pooled_all, w_full,
                   preferred_element_type=jnp.float32)     # (B*K, OUT_PAD)

    logit_rows = []
    for b in range(b_rows):
        fb = full[b * k_heads:(b + 1) * k_heads, :]        # (K, OUT_PAD)
        logit_rows.append(jnp.sum(fb * sel, axis=0, keepdims=True))
    logits = jnp.concatenate(logit_rows, axis=0) + bias    # (B, OUT_PAD)

    # sigmoid only on the prop slice (lanes [ANS, ANS+PROP)), rest passthrough.
    lane = jax.lax.broadcasted_iota(jnp.int32, logits.shape, 1)
    is_prop = (lane >= ANS_CLASS) & (lane < ANS_CLASS + PROP_LABEL)
    out_ref[...] = jnp.where(is_prop, jax.nn.sigmoid(logits), logits)


def prepare_slabs(params):
    """Pack the 14 tiny parameters into 2 VMEM slabs, ONCE (hoisted out of the
    per-call path per performance review)."""
    h, k = H, NUM_HEADS
    head_slab = jnp.zeros((2 + 2 * k, h), jnp.float32)
    head_slab = head_slab.at[0].set(params["ln_g"])
    head_slab = head_slab.at[1].set(params["ln_b"])
    head_slab = head_slab.at[2:2 + k].set(params["att_w"])
    head_slab = head_slab.at[2 + k:2 + 2 * k, 0].set(params["att_b"])

    # classifier slab: rows [0:H] column-packed weights, [H] concatenated bias,
    # [H+1 : H+1+K] per-head 0/1 column-selection masks; lanes padded to 128.
    cls_slab = jnp.zeros((h + 1 + k, OUT_PAD), jnp.float32)
    col = 0
    packed = [(params["Wa"], params["ba"], ANS_CLASS),
              (params["Wp"], params["bp"], PROP_LABEL),
              (params["We"], params["be"], ENTITY_CLASS)]
    for kk, (w, bias_k, n) in enumerate(packed):
        cls_slab = cls_slab.at[:h, col:col + n].set(w)
        cls_slab = cls_slab.at[h, col:col + n].set(bias_k)
        cls_slab = cls_slab.at[h + 1 + kk, col:col + n].set(1.0)
        col += n
    return head_slab, cls_slab


@jax.jit
def pt_model_task_attention(input_ids, hidden_states, head_slab, cls_slab):
    """LayerNorm + 3 attention pools + 3 classifiers, fused in one Pallas kernel."""
    b, s = input_ids.shape
    h = hidden_states.shape[-1]
    k = NUM_HEADS

    ids = input_ids.astype(jnp.int32)
    x2 = hidden_states.astype(jnp.float32).reshape(b * s, h)

    out = pl.pallas_call(
        _fused_kernel,
        grid=(1,),                                          # single grid step
        in_specs=[
            pl.BlockSpec((b, s), lambda i: (0, 0)),
            pl.BlockSpec((b * s, h), lambda i: (0, 0)),
            pl.BlockSpec((2 + 2 * k, h), lambda i: (0, 0)),
            pl.BlockSpec((h + 1 + k, OUT_PAD), lambda i: (0, 0)),
        ],
        out_specs=pl.BlockSpec((b, OUT_PAD), lambda i: (0, 0)),
        out_shape=jax.ShapeDtypeStruct((b, OUT_PAD), jnp.float32),
        compiler_params=pltpu.CompilerParams(
            dimension_semantics=("arbitrary",)),
    )(ids, x2, head_slab, cls_slab)

    ans = out[:, :ANS_CLASS]
    prop = out[:, ANS_CLASS:ANS_CLASS + PROP_LABEL]
    ent = out[:, ANS_CLASS + PROP_LABEL:ANS_CLASS + PROP_LABEL + ENTITY_CLASS]
    return ans, prop, ent


def _reference(input_ids, hidden_states, params):
    """Pure-JAX reference mirroring the PyTorch forward."""
    x = hidden_states.astype(jnp.float32)
    mean = jnp.mean(x, axis=-1, keepdims=True)
    var = jnp.mean((x - mean) ** 2, axis=-1, keepdims=True)
    xn = (x - mean) / jnp.sqrt(var + LN_EPS)
    xn = xn * params["ln_g"] + params["ln_b"]
    pad = input_ids == 0
    outs = []
    packed = [(params["Wa"], params["ba"]), (params["Wp"], params["bp"]),
              (params["We"], params["be"])]
    for k, (w, bias_k) in enumerate(packed):
        score = jnp.einsum("bsh,h->bs", xn, params["att_w"][k]) + params["att_b"][k]
        score = jnp.where(pad, -1e9, score)
        p = jax.nn.softmax(score, axis=-1)
        pooled = jnp.einsum("bs,bsh->bh", p, xn)
        outs.append(pooled @ w + bias_k)
    ans, prop, ent = outs
    return ans, jax.nn.sigmoid(prop), ent


def _init_params(key):
    ks = jax.random.split(key, 10)
    sc = 0.05
    return {
        "ln_g": jnp.ones((H,), jnp.float32),
        "ln_b": jnp.zeros((H,), jnp.float32),
        "att_w": jax.random.normal(ks[0], (NUM_HEADS, H), jnp.float32) * sc,
        "att_b": jax.random.normal(ks[1], (NUM_HEADS,), jnp.float32) * sc,
        "Wa": jax.random.normal(ks[2], (H, ANS_CLASS), jnp.float32) * sc,
        "ba": jax.random.normal(ks[3], (ANS_CLASS,), jnp.float32) * sc,
        "Wp": jax.random.normal(ks[4], (H, PROP_LABEL), jnp.float32) * sc,
        "bp": jax.random.normal(ks[5], (PROP_LABEL,), jnp.float32) * sc,
        "We": jax.random.normal(ks[6], (H, ENTITY_CLASS), jnp.float32) * sc,
        "be": jax.random.normal(ks[7], (ENTITY_CLASS,), jnp.float32) * sc,
        # Deterministic stand-in for the external encoder (embedding table).
        "emb": jax.random.normal(ks[8], (VOCAB, H), jnp.float32) * 0.5,
    }


if __name__ == "__main__":
    key = jax.random.PRNGKey(0)
    k_params, k_ids = jax.random.split(key)
    params = _init_params(k_params)

    # Parameter slabs packed ONCE (not per forward call).
    head_slab, cls_slab = prepare_slabs(params)
    head_slab, cls_slab = jax.block_until_ready((head_slab, cls_slab))

    # Deterministic example inputs; trailing zeros act as padding (mask).
    input_ids = jax.random.randint(k_ids, (B, S), 1, VOCAB).astype(jnp.int32)
    input_ids = input_ids.at[0, 6:].set(0)
    input_ids = input_ids.at[1, 5:].set(0)

    # Glue: stand-in for `self.model(input_ids, ...)[0]` (last_hidden_state).
    hidden_states = params["emb"][input_ids]                 # (B, S, H)

    outs = pt_model_task_attention(input_ids, hidden_states, head_slab, cls_slab)
    outs = jax.block_until_ready(outs)
    ans, prop, ent = outs

    assert ans.shape == (B, ANS_CLASS)
    assert prop.shape == (B, PROP_LABEL)
    assert ent.shape == (B, ENTITY_CLASS)
    assert bool(jnp.all(jnp.isfinite(ans)))
    assert bool(jnp.all((prop >= 0.0) & (prop <= 1.0)))      # sigmoid range

    # Tolerance check against the pure-JAX reference (exact softmax division;
    # residual error is MXU default-precision f32 matmuls on both sides).
    ra, rp, re = _reference(input_ids, hidden_states, params)
    assert bool(jnp.allclose(ans, ra, atol=5e-3, rtol=5e-3))
    assert bool(jnp.allclose(prop, rp, atol=5e-3, rtol=5e-3))
    assert bool(jnp.allclose(ent, re, atol=5e-3, rtol=5e-3))

    print("KERNEL_OK")
</pallas_src>

<mosaic_0001>
module attributes {stable_mosaic.version = 11 : i64} {
  func.func @_fused_kernel(%arg0: i32, %arg1: memref<2x8xi32, #tpu.memory_space<vmem>>, %arg2: memref<16x32xf32, #tpu.memory_space<vmem>>, %arg3: memref<8x32xf32, #tpu.memory_space<vmem>>, %arg4: memref<36x128xf32, #tpu.memory_space<vmem>>, %arg5: memref<2x128xf32, #tpu.memory_space<vmem>>) attributes {dimension_semantics = [#tpu.dimension_semantics<arbitrary>], iteration_bounds = array<i64: 1>, scalar_prefetch = 0 : i64, scratch_operands = 0 : i64, tpu.core_type = #tpu.core_type<tc>, window_params = [{pipeline_mode = #tpu.pipeline_mode<synchronous>, transform_indices = @transform_0, window_bounds = array<i64: 2, 8>}, {pipeline_mode = #tpu.pipeline_mode<synchronous>, transform_indices = @transform_1, window_bounds = array<i64: 16, 32>}, {pipeline_mode = #tpu.pipeline_mode<synchronous>, transform_indices = @transform_2, window_bounds = array<i64: 8, 32>}, {pipeline_mode = #tpu.pipeline_mode<synchronous>, transform_indices = @transform_3, window_bounds = array<i64: 36, 128>}, {pipeline_mode = #tpu.pipeline_mode<synchronous>, transform_indices = @transform_4, window_bounds = array<i64: 2, 128>}]} {
    %c0 = arith.constant 0 : index
    %c0_0 = arith.constant 0 : index
    %0 = vector.load %arg2[%c0, %c0_0] : memref<16x32xf32, #tpu.memory_space<vmem>>, vector<16x32xf32>
    %c0_1 = arith.constant 0 : index
    %c0_2 = arith.constant 0 : index
    %1 = vector.load %arg1[%c0_1, %c0_2] : memref<2x8xi32, #tpu.memory_space<vmem>>, vector<2x8xi32>
    %c0_3 = arith.constant 0 : index
    %c0_4 = arith.constant 0 : index
    %2 = vector.load %arg3[%c0_3, %c0_4] : memref<8x32xf32, #tpu.memory_space<vmem>>, vector<1x32xf32>
    %c1 = arith.constant 1 : index
    %c0_5 = arith.constant 0 : index
    %3 = vector.load %arg3[%c1, %c0_5] : memref<8x32xf32, #tpu.memory_space<vmem>>, vector<1x32xf32>
    %c2 = arith.constant 2 : index
    %c0_6 = arith.constant 0 : index
    %4 = vector.load %arg3[%c2, %c0_6] : memref<8x32xf32, #tpu.memory_space<vmem>>, vector<3x32xf32>
    %c5 = arith.constant 5 : index
    %c0_7 = arith.constant 0 : index
    %5 = vector.load %arg3[%c5, %c0_7] : memref<8x32xf32, #tpu.memory_space<vmem>>, vector<3x1xf32>
    %cst = arith.constant dense<0.000000e+00> : vector<16xf32>
    %6 = vector.multi_reduction <add>, %0, %cst [1] : vector<16x32xf32> to vector<16xf32>
    %7 = vector.shape_cast %6 : vector<16xf32> to vector<16x1xf32>
    %cst_8 = arith.constant 3.200000e+01 : f32
    %8 = vector.broadcast %cst_8 : f32 to vector<16x1xf32>
    %9 = arith.divf %7, %8 : vector<16x1xf32>
    %10 = vector.broadcast %9 : vector<16x1xf32> to vector<16x32xf32>
    %11 = arith.subf %0, %10 : vector<16x32xf32>
    %12 = arith.mulf %11, %11 : vector<16x32xf32>
    %cst_9 = arith.constant dense<0.000000e+00> : vector<16xf32>
    %13 = vector.multi_reduction <add>, %12, %cst_9 [1] : vector<16x32xf32> to vector<16xf32>
    %14 = vector.shape_cast %13 : vector<16xf32> to vector<16x1xf32>
    %cst_10 = arith.constant 3.200000e+01 : f32
    %15 = vector.broadcast %cst_10 : f32 to vector<16x1xf32>
    %16 = arith.divf %14, %15 : vector<16x1xf32>
    %cst_11 = arith.constant 9.99999974E-6 : f32
    %17 = vector.broadcast %cst_11 : f32 to vector<16x1xf32>
    %18 = arith.addf %16, %17 : vector<16x1xf32>
    %19 = math.rsqrt %18 : vector<16x1xf32>
    %20 = vector.broadcast %19 : vector<16x1xf32> to vector<16x32xf32>
    %21 = arith.mulf %11, %20 : vector<16x32xf32>
    %22 = vector.broadcast %2 : vector<1x32xf32> to vector<16x32xf32>
    %23 = arith.mulf %21, %22 : vector<16x32xf32>
    %24 = vector.broadcast %3 : vector<1x32xf32> to vector<16x32xf32>
    %25 = arith.addf %23, %24 : vector<16x32xf32>
    %cst_12 = arith.constant dense<0.000000e+00> : vector<3x16xf32>
    %26 = tpu.matmul %4, %25, %cst_12 {dimension_numbers = #tpu.dot_dimension_numbers<[1], [1], [0], [0], [0, 0, 1, 0], [], []>} : vector<3x32xf32>, vector<16x32xf32>, vector<3x16xf32> -> vector<3x16xf32>
    %27 = vector.broadcast %5 : vector<3x1xf32> to vector<3x16xf32>
    %28 = arith.addf %26, %27 : vector<3x16xf32>
    %c0_i32 = arith.constant 0 : i32
    %29 = vector.broadcast %c0_i32 : i32 to vector<2x8xi32>
    %30 = arith.cmpi eq, %1, %29 : vector<2x8xi32>
    %31 = vector.extract_strided_slice %28 {offsets = [0, 0], sizes = [3, 8], strides = [1, 1]} : vector<3x16xf32> to vector<3x8xf32>
    %32 = vector.extract_strided_slice %30 {offsets = [0, 0], sizes = [1, 8], strides = [1, 1]} : vector<2x8xi1> to vector<1x8xi1>
    %cst_13 = arith.constant -1.000000e+09 : f32
    %33 = vector.shape_cast %32 : vector<1x8xi1> to vector<1x8xi1>
    %34 = vector.broadcast %33 : vector<1x8xi1> to vector<3x8xi1>
    %35 = vector.broadcast %cst_13 : f32 to vector<3x8xf32>
    %36 = arith.select %34, %35, %31 : vector<3x8xi1>, vector<3x8xf32>
    %cst_14 = arith.constant dense<0xFF800000> : vector<3xf32>
    %37 = vector.multi_reduction <maximumf>, %36, %cst_14 [1] : vector<3x8xf32> to vector<3xf32>
    %38 = vector.shape_cast %37 : vector<3xf32> to vector<3x1xf32>
    %39 = vector.broadcast %38 : vector<3x1xf32> to vector<3x8xf32>
    %40 = arith.subf %36, %39 : vector<3x8xf32>
    %41 = math.exp %40 : vector<3x8xf32>
    %cst_15 = arith.constant dense<0.000000e+00> : vector<3xf32>
    %42 = vector.multi_reduction <add>, %41, %cst_15 [1] : vector<3x8xf32> to vector<3xf32>
    %43 = vector.shape_cast %42 : vector<3xf32> to vector<3x1xf32>
    %44 = vector.broadcast %43 : vector<3x1xf32> to vector<3x8xf32>
    %45 = arith.divf %41, %44 : vector<3x8xf32>
    %46 = vector.extract_strided_slice %25 {offsets = [0, 0], sizes = [8, 32], strides = [1, 1]} : vector<16x32xf32> to vector<8x32xf32>
    %cst_16 = arith.constant dense<0.000000e+00> : vector<3x32xf32>
    %47 = tpu.matmul %45, %46, %cst_16 {dimension_numbers = #tpu.dot_dimension_numbers<[1], [0], [0], [1], [0, 0, 1, 1], [], []>} : vector<3x8xf32>, vector<8x32xf32>, vector<3x32xf32> -> vector<3x32xf32>
    %48 = vector.extract_strided_slice %28 {offsets = [0, 8], sizes = [3, 8], strides = [1, 1]} : vector<3x16xf32> to vector<3x8xf32>
    %49 = vector.extract_strided_slice %30 {offsets = [1, 0], sizes = [1, 8], strides = [1, 1]} : vector<2x8xi1> to vector<1x8xi1>
    %cst_17 = arith.constant -1.000000e+09 : f32
    %50 = vector.shape_cast %49 : vector<1x8xi1> to vector<1x8xi1>
    %51 = vector.broadcast %50 : vector<1x8xi1> to vector<3x8xi1>
    %52 = vector.broadcast %cst_17 : f32 to vector<3x8xf32>
    %53 = arith.select %51, %52, %48 : vector<3x8xi1>, vector<3x8xf32>
    %cst_18 = arith.constant dense<0xFF800000> : vector<3xf32>
    %54 = vector.multi_reduction <maximumf>, %53, %cst_18 [1] : vector<3x8xf32> to vector<3xf32>
    %55 = vector.shape_cast %54 : vector<3xf32> to vector<3x1xf32>
    %56 = vector.broadcast %55 : vector<3x1xf32> to vector<3x8xf32>
    %57 = arith.subf %53, %56 : vector<3x8xf32>
    %58 = math.exp %57 : vector<3x8xf32>
    %cst_19 = arith.constant dense<0.000000e+00> : vector<3xf32>
    %59 = vector.multi_reduction <add>, %58, %cst_19 [1] : vector<3x8xf32> to vector<3xf32>
    %60 = vector.shape_cast %59 : vector<3xf32> to vector<3x1xf32>
    %61 = vector.broadcast %60 : vector<3x1xf32> to vector<3x8xf32>
    %62 = arith.divf %58, %61 : vector<3x8xf32>
    %63 = vector.extract_strided_slice %25 {offsets = [8, 0], sizes = [8, 32], strides = [1, 1]} : vector<16x32xf32> to vector<8x32xf32>
    %cst_20 = arith.constant dense<0.000000e+00> : vector<3x32xf32>
    %64 = tpu.matmul %62, %63, %cst_20 {dimension_numbers = #tpu.dot_dimension_numbers<[1], [0], [0], [1], [0, 0, 1, 1], [], []>} : vector<3x8xf32>, vector<8x32xf32>, vector<3x32xf32> -> vector<3x32xf32>
    %65 = tpu.concatenate %47, %64 in 0 : vector<3x32xf32>, vector<3x32xf32> -> vector<6x32xf32>
    %c0_21 = arith.constant 0 : index
    %c0_22 = arith.constant 0 : index
    %66 = vector.load %arg4[%c0_21, %c0_22] : memref<36x128xf32, #tpu.memory_space<vmem>>, vector<32x128xf32>
    %c32 = arith.constant 32 : index
    %c0_23 = arith.constant 0 : index
    %67 = vector.load %arg4[%c32, %c0_23] : memref<36x128xf32, #tpu.memory_space<vmem>>, vector<1x128xf32>
    %c33 = arith.constant 33 : index
    %c0_24 = arith.constant 0 : index
    %68 = vector.load %arg4[%c33, %c0_24] : memref<36x128xf32, #tpu.memory_space<vmem>>, vector<3x128xf32>
    %cst_25 = arith.constant dense<0.000000e+00> : vector<6x128xf32>
    %69 = tpu.matmul %65, %66, %cst_25 {dimension_numbers = #tpu.dot_dimension_numbers<[1], [0], [0], [1], [0, 0, 1, 1], [], []>} : vector<6x32xf32>, vector<32x128xf32>, vector<6x128xf32> -> vector<6x128xf32>
    %70 = vector.extract_strided_slice %69 {offsets = [0, 0], sizes = [3, 128], strides = [1, 1]} : vector<6x128xf32> to vector<3x128xf32>
    %71 = arith.mulf %70, %68 : vector<3x128xf32>
    %cst_26 = arith.constant dense<0.000000e+00> : vector<128xf32>
    %72 = vector.multi_reduction <add>, %71, %cst_26 [0] : vector<3x128xf32> to vector<128xf32>
    %73 = vector.shape_cast %72 : vector<128xf32> to vector<1x128xf32>
    %74 = vector.extract_strided_slice %69 {offsets = [3, 0], sizes = [3, 128], strides = [1, 1]} : vector<6x128xf32> to vector<3x128xf32>
    %75 = arith.mulf %74, %68 : vector<3x128xf32>
    %cst_27 = arith.constant dense<0.000000e+00> : vector<128xf32>
    %76 = vector.multi_reduction <add>, %75, %cst_27 [0] : vector<3x128xf32> to vector<128xf32>
    %77 = vector.shape_cast %76 : vector<128xf32> to vector<1x128xf32>
    %78 = tpu.concatenate %73, %77 in 0 : vector<1x128xf32>, vector<1x128xf32> -> vector<2x128xf32>
    %79 = vector.broadcast %67 : vector<1x128xf32> to vector<2x128xf32>
    %80 = arith.addf %78, %79 : vector<2x128xf32>
    %81 = tpu.iota {dimensions = array<i32: 1>} : vector<2x128xi32>
    %c4_i32 = arith.constant 4 : i32
    %82 = vector.broadcast %c4_i32 : i32 to vector<2x128xi32>
    %83 = arith.cmpi sge, %81, %82 : vector<2x128xi32>
    %c10_i32 = arith.constant 10 : i32
    %84 = vector.broadcast %c10_i32 : i32 to vector<2x128xi32>
    %85 = arith.cmpi slt, %81, %84 : vector<2x128xi32>
    %86 = arith.andi %83, %85 : vector<2x128xi1>
    %87 = arith.negf %80 : vector<2x128xf32>
    %88 = math.exp %87 : vector<2x128xf32>
    %cst_28 = arith.constant 1.000000e+00 : f32
    %89 = vector.broadcast %cst_28 : f32 to vector<2x128xf32>
    %90 = arith.addf %89, %88 : vector<2x128xf32>
    %91 = arith.divf %89, %90 : vector<2x128xf32>
    %92 = arith.select %86, %91, %80 : vector<2x128xi1>, vector<2x128xf32>
    %c0_29 = arith.constant 0 : index
    %c0_30 = arith.constant 0 : index
    %93 = vector.load %arg5[%c0_29, %c0_30] : memref<2x128xf32, #tpu.memory_space<vmem>>, vector<2x128xf32>
    tpu.vector_store %arg5[%c0_29, %c0_30], %92 {strides = array<i32>} : memref<2x128xf32, #tpu.memory_space<vmem>>, vector<2x128xf32>,
    return
  }
  func.func @transform_0(%arg0: i32) -> (i32, i32) {
    %c0_i32 = arith.constant 0 : i32
    %c0_i32_0 = arith.constant 0 : i32
    %c0_i32_1 = arith.constant 0 : i32
    return %c0_i32, %c0_i32_0 : i32, i32
  }
  func.func @transform_1(%arg0: i32) -> (i32, i32) {
    %c0_i32 = arith.constant 0 : i32
    %c0_i32_0 = arith.constant 0 : i32
    %c0_i32_1 = arith.constant 0 : i32
    return %c0_i32, %c0_i32_0 : i32, i32
  }
  func.func @transform_2(%arg0: i32) -> (i32, i32) {
    %c0_i32 = arith.constant 0 : i32
    %c0_i32_0 = arith.constant 0 : i32
    %c0_i32_1 = arith.constant 0 : i32
    return %c0_i32, %c0_i32_0 : i32, i32
  }
  func.func @transform_3(%arg0: i32) -> (i32, i32) {
    %c0_i32 = arith.constant 0 : i32
    %c0_i32_0 = arith.constant 0 : i32
    %c0_i32_1 = arith.constant 0 : i32
    return %c0_i32, %c0_i32_0 : i32, i32
  }
  func.func @transform_4(%arg0: i32) -> (i32, i32) {
    %c0_i32 = arith.constant 0 : i32
    %c0_i32_0 = arith.constant 0 : i32
    %c0_i32_1 = arith.constant 0 : i32
    return %c0_i32, %c0_i32_0 : i32, i32
  }
}

</mosaic_0001>

<bundles_post_ra>
// kernel: pt_model_task_attention.1
= control target key start
LH: loop header
LB: loop body
LE: loop exit
PB: predicated region body
PF: predicated region fallthrough
CT: control target
= control target key end

     0   :  { %9 = vsyncpa [#allocation3], 0  ;;  %s801_s0 = inlined_call_operand.hbm [shape: s32[2,8], index: 0, kind: input, shape index: {}]   ;;  %s802_s1 = inlined_call_operand.hbm [shape: f32[16,32], index: 1, kind: input, shape index: {}]   ;;  %s803_s2 = inlined_call_operand.hbm [shape: f32[8,32], index: 2, kind: input, shape index: {}]   ;;  %s804_s3 = inlined_call_operand.hbm [shape: f32[36,128], index: 3, kind: input, shape index: {}]   ;;  %s805_s4 = inlined_call_operand.vmem [shape: f32[2,128], index: 4, kind: output, shape index: {}]  }
   0x1   :  { %10 = vsyncpa [#allocation5], 0  ;;  %s27_s17 = sshll.u32 %s802_s1, 4  ;;  %s28_s17 = int_to_ptr.hbm [resolvable:$true] %s27_s17 }
   0x2   :  { %11 = vsyncpa [#allocation8], 0  ;;  %s690_s18 = smov [#allocation4]   ;;  %s17_s22 = sshll.u32 %s801_s0, 4  ;;  %s18_s22 = int_to_ptr.hbm [resolvable:$true] %s17_s22 }
   0x3   :  { %s29_s19 = sshll.u32 %s690_s18, 4  ;;  %s691_s23 = smov 128   ;;  %s30_s19 = int_to_ptr.vmem [resolvable:$true] %s29_s19 }
   0x4   :  { %s692_s24 = smov 8   ;;  %s693_s25 = smov [#allocation2]  }
   0x5   :  { %35 = dma.hbm_to_vmem [thread:$0]  %s28_s17, 256, %s30_s19, [#allocation5], %s691_s23, %s691_s23, %s692_s24  }
   0x6   :  { %s19_s26 = sshll.u32 %s693_s25, 4  ;;  %s41_s29 = sshll.u32 %s803_s2, 4  ;;  %s20_s26 = int_to_ptr.vmem [resolvable:$true] %s19_s26  ;;  %s42_s29 = int_to_ptr.hbm [resolvable:$true] %s41_s29 }
   0x7   :  { %22 = dma.hbm_to_vmem [thread:$0]  %s18_s22, 32, %s20_s26, [#allocation3]  }
   0x8   :  { %s51_s5 = sshll.u32 %s804_s3, 4  ;;  %s694_s6 = smov [#allocation6]   ;;  %s52_s5 = int_to_ptr.hbm [resolvable:$true] %s51_s5 }
   0x9   :  { %s43_s7 = sshll.u32 %s694_s6, 4  ;;  %s695_s0 = smov [#allocation7]   ;;  %s44_s7 = int_to_ptr.vmem [resolvable:$true] %s43_s7 }
   0xa   :  { %46 = dma.hbm_to_vmem [thread:$0]  %s42_s29, 128, %s44_s7, [#allocation5]  }
   0xb   :  { %s53_s8 = sshll.u32 %s695_s0, 4  ;;  %s54_s8 = int_to_ptr.vmem [resolvable:$true] %s53_s8 }
   0xc   :  { %59 = dma.hbm_to_vmem [thread:$0]  %s52_s5, 640, %s54_s8, [#allocation8], %s691_s23, %s691_s23, %s692_s24  }
   0xd   :  { %684 = dma.done.wait [#allocation3], 32  }
   0xe   :  { %685 = vsyncadd [#allocation3], 4294967264 }
   0xf   :  { %686 = dma.done.wait [#allocation5], 384  }
  0x10   :  { %687 = vsyncadd [#allocation5], 4294966912 }
  0x11   :  { %688 = dma.done.wait [#allocation8], 640  }
  0x12   :  { %689 = vsyncadd [#allocation8], 4294966656  ;;  %vm83_vm0 = vcmask 261120   ;;  %v77_v0 = vld [vmem:[#allocation4 + $0x8] sm:$0xff]  ;;  %v76_v2 = vld [vmem:[#allocation4] sm:$0xff]  ;;  %v696_v4 = vmov 32.0  }
  0x13   :  { %v87_v1 = vsel %vm83_vm0, %v77_v0, 0.0  ;;  %v84_v3 = vsel %vm83_vm0, %v76_v2, 0.0  ;;  %554 = vrcp.f32 %v696_v4  ;;  %v82_v25 = vld [vmem:[#allocation6 + $0x5] sm:$0x7]  ;;  %v697_v27 = vmov 0   ;;  %s698_s2 = smov 120  }
  0x14   :  { %88 = vadd.xlane.f32.xlu0 %v87_v1  ;;  %549 = vset.pattern.permute.xlu2 %v697_v27  ;;  %v551_v37 = vld [vmem:[#allocation6] ss:$0 sm:$0xff]  ;;  %v552_v41 = vld [vmem:[#allocation6 + $0x1] ss:$0 sm:$0xff]  ;;  %v81_v51 = vld [vmem:[#allocation6 + $0x2] sm:$0x7] }
  0x15   :  { %550 = vset.pattern.permute.xlu0 %v697_v27  ;;  %143 = vperm.xlu2 %549, %v82_v25   ;;  %v78_v57 = vld [vmem:[#allocation2] sm:$0x3]  ;;  %vm191_vm9 = vcmask 1041409   ;;  %vm194_vm10 = vcmask 1042434   ;;  %vm197_vm11 = vcmask 59392   ;;  %vm327_vm12 = vcmask 1043459  }
  0x16   :  { %vm175_vm8 = vcmp.eq.s32.totalorder %v78_v57, 0  ;;  %vm330_vm13 = vcmask 60417  }
  0x19   :  { %v555_v5 = vpop.eup %554 }
  0x1a   :  { %v91_v6 = vmul.f32 32.0, %v555_v5  ;;  %vm95_vm1 = vweird.f32 %v555_v5 }
  0x1c   :  { %85 = vadd.xlane.f32.xlu0 %v84_v3  ;;  %v92_v7 = vsub.f32 1.0, %v91_v6 }
  0x1e   :  { %v93_v8 = vmul.f32 %v555_v5, %v92_v7 }
  0x20   :  { %v94_v9 = vadd.f32 %v555_v5, %v93_v8 }
  0x22   :  { %v96_v10 = vsel %vm95_vm1, %v555_v5, %v94_v9 }
  0x6f   :  { %v144_v52 = vpop.permute.xlu2 %143 }
  0x87   :  { %v89_v11 = vpop.xlane.xlu0 %88 }
  0x88   :  { %v98_v12 = vmul.f32 %v96_v10, %v89_v11 }
  0x8a   :  { %v100_v13 = vsub.f32 %v77_v0, %v98_v12 }
  0x8c   :  { %v102_v14 = vmul.f32 %v100_v13, %v100_v13 }
  0x8e   :  { %v106_v15 = vsel %vm83_vm0, %v102_v14, 0.0 }
  0x8f   :  { %107 = vadd.xlane.f32.xlu1 %v106_v15  ;;  %v86_v16 = vpop.xlane.xlu0 %85 }
  0x90   :  { %v97_v17 = vmul.f32 %v96_v10, %v86_v16 }
  0x92   :  { %v99_v18 = vsub.f32 %v76_v2, %v97_v17 }
  0x94   :  { %v101_v19 = vmul.f32 %v99_v18, %v99_v18 }
  0x96   :  { %v103_v20 = vsel %vm83_vm0, %v101_v19, 0.0 }
  0x97   :  { %104 = vadd.xlane.f32.xlu1 %v103_v20 }
 0x102   :  { %v108_v21 = vpop.xlane.xlu1 %107 }
 0x103   :  { %v110_v22 = vmul.f32 %v108_v21, %v96_v10 }
 0x105   :  { %v112_v23 = vadd.f32 1e-05, %v110_v22 }
 0x107   :  { %556 = vrsqrt.f32 %v112_v23  ;;  %vm129_vm3 = vweird.f32 %v112_v23 }
 0x10a   :  { %v105_v24 = vpop.xlane.xlu1 %104 }
 0x10b   :  { %v109_v26 = vmul.f32 %v105_v24, %v96_v10 }
 0x10d   :  { %v557_v28 = vpop.eup %556  ;;  %v111_v29 = vadd.f32 1e-05, %v109_v26 }
 0x10e   :  { %v124_v30 = vmul.f32 %v557_v28, %v112_v23  ;;  %vm130_vm2 = vweird.f32 %v557_v28 }
 0x10f   :  { %558 = vrsqrt.f32 %v111_v29  ;;  %vm131_vm4 = vmor %vm129_vm3, %vm130_vm2  ;;  %vm119_vm6 = vweird.f32 %v111_v29 }
 0x110   :  { %v125_v31 = vmul.f32 %v557_v28, %v124_v30 }
 0x112   :  { %v126_v32 = vmul.f32 0.5, %v125_v31 }
 0x114   :  { %v127_v33 = vsub.f32 1.5, %v126_v32 }
 0x115   :  { %v559_v34 = vpop.eup %558 }
 0x116   :  { %v128_v35 = vmul.f32 %v557_v28, %v127_v33  ;;  %v114_v36 = vmul.f32 %v559_v34, %v111_v29  ;;  %vm120_vm5 = vweird.f32 %v559_v34 }
 0x117   :  { %vm121_vm7 = vmor %vm119_vm6, %vm120_vm5 }
 0x118   :  { %v115_v38 = vmul.f32 %v559_v34, %v114_v36  ;;  %v132_v39 = vsel %vm131_vm4, %v557_v28, %v128_v35 }
 0x119   :  { %v134_v40 = vmul.f32 %v132_v39, %v100_v13 }
 0x11a   :  { %v116_v42 = vmul.f32 0.5, %v115_v38 }
 0x11b   :  { %v137_v43 = vmul.f32 %v551_v37, %v134_v40 }
 0x11c   :  { %v117_v44 = vsub.f32 1.5, %v116_v42 }
 0x11d   :  { %v140_v45 = vadd.f32 %v552_v41, %v137_v43 }
 0x11e   :  { %v118_v46 = vmul.f32 %v559_v34, %v117_v44 }
 0x11f   :  { %533 = vmatpush.xpose.msk.msra.mxu0 %vm83_vm0, %v140_v45  ;;  %435 = vmatpush.msra.mxu2 %v140_v45 }
 0x120   :  { %v122_v47 = vsel %vm121_vm7, %v559_v34, %v118_v46 }
 0x121   :  { %v133_v48 = vmul.f32 %v122_v47, %v99_v18 }
 0x123   :  { %v136_v49 = vmul.f32 %v551_v37, %v133_v48 }
 0x125   :  { %v139_v50 = vadd.f32 %v552_v41, %v136_v49 }
 0x127   :  { %534 = vmatpush.xpose.msk.msra.mxu0 %vm83_vm0, %v139_v50  ;;  %303 = vmatpush.msra.mxu1 %v139_v50 }
 0x12a   :  { %535 = vmatmul.msk.f32.vlgmr.msra.gmra.mxu0 %vm83_vm0, %v81_v51 }
 0x1a7   :  { %v172_v53 = vpop.f32.mrf.mxu0 }
 0x1a8   :  { %v173_v54 = vadd.f32 %v172_v53, %v144_v52 }
 0x1aa   :  { %311 = vrot.lane.b32.xlu2 %v173_v54, %s698_s2  ;;  %v308_v55 = vrot.slane %v173_v54, 7  ;;  %v179_v56 = vrot.slane %v173_v54, 1  ;;  %v180_v58 = vrot.slane %v173_v54, 2  ;;  %v184_v62 = vsel %vm175_vm8, -1e+09, %v173_v54 }
 0x1ac   :  { %309 = vrot.lane.b32.xlu1 %v308_v55, %s698_s2  ;;  %313 = vrot.lane.b32.xlu0 %v179_v56, %s698_s2  ;;  %v185_v59 = vsel %vm175_vm8, -1e+09, %v179_v56  ;;  %v186_v61 = vsel %vm175_vm8, -1e+09, %v180_v58 }
 0x1ad   :  { %v190_v60 = vrot.slane %v185_v59, 7  ;;  %v193_v63 = vrot.slane %v186_v61, 6 }
 0x1af   :  { %v192_v0 = vsel %vm191_vm9, %v190_v60, %v184_v62 }
 0x1b0   :  { %v195_v1 = vsel %vm194_vm10, %v193_v63, %v192_v0 }
 0x1b1   :  { %v198_v2 = vsel %vm197_vm11, %v195_v1, -inf }
 0x1d6   :  { %199 = vmax.xlane.f32.xlu0 %v198_v2 }
 0x204   :  { %v312_v3 = vpop.permute.xlu2 %311 }
 0x205   :  { %v319_v4 = vsel %vm175_vm8, -1e+09, %v312_v3 }
 0x206   :  { %v324_v5 = vrot.slane %v319_v4, 7 }
 0x21e   :  { %v310_v6 = vpop.permute.xlu1 %309  ;;  %v314_v7 = vpop.permute.xlu0 %313 }
 0x21f   :  { %v318_v8 = vsel %vm175_vm8, -1e+09, %v310_v6  ;;  %v320_v9 = vsel %vm175_vm8, -1e+09, %v314_v7 }
 0x220   :  { %v325_v10 = vsel %vm194_vm10, %v324_v5, %v318_v8  ;;  %v326_v11 = vrot.slane %v320_v9, 6 }
 0x222   :  { %v328_v12 = vsel %vm327_vm12, %v326_v11, %v325_v10 }
 0x223   :  { %v331_v13 = vsel %vm330_vm13, %v328_v12, -inf }
 0x224   :  { %332 = vmax.xlane.f32.xlu2 %v331_v13 }
 0x249   :  { %v200_v14 = vpop.xlane.xlu0 %199 }
 0x24a   :  { %v202_v15 = vrot.slane %v200_v14, 1  ;;  %v203_v16 = vrot.slane %v200_v14, 2  ;;  %v207_v17 = vsub.f32 %v184_v62, %v200_v14 }
 0x24c   :  { %v208_v18 = vsub.f32 %v185_v59, %v202_v15  ;;  %v209_v19 = vsub.f32 %v186_v61, %v203_v16  ;;  %v210_v20 = vmul.f32 1.442695, %v207_v17 }
 0x24e   :  { %v212_v21 = vmul.f32 1.442695, %v208_v18  ;;  %v214_v22 = vmul.f32 1.442695, %v209_v19 }
 0x250   :  { %560 = vpow2.f32 %v212_v21 }
 0x251   :  { %562 = vpow2.f32 %v214_v22 }
 0x252   :  { %564 = vpow2.f32 %v210_v20 }
 0x256   :  { %v755_v23 = vpop.eup %560 }
 0x257   :  { %v757_v24 = vpop.eup %562  ;;  %v219_v25 = vrot.slane %v755_v23, 7 }
 0x258   :  { %v760_v26 = vpop.eup %564  ;;  %v221_v27 = vrot.slane %v757_v24, 6 }
 0x259   :  { %v220_v28 = vsel %vm191_vm9, %v219_v25, %v760_v26 }
 0x25a   :  { %v222_v29 = vsel %vm194_vm10, %v221_v27, %v220_v28 }
 0x25b   :  { %v224_v30 = vsel %vm197_vm11, %v222_v29, 0.0 }
 0x25c   :  { %225 = vadd.xlane.f32.xlu2 %v224_v30 }
 0x297   :  { %v333_v31 = vpop.xlane.xlu2 %332 }
 0x298   :  { %v335_v32 = vrot.slane %v333_v31, 1  ;;  %v336_v33 = vrot.slane %v333_v31, 2  ;;  %v340_v34 = vsub.f32 %v318_v8, %v333_v31 }
 0x29a   :  { %v341_v35 = vsub.f32 %v319_v4, %v335_v32  ;;  %v342_v36 = vsub.f32 %v320_v9, %v336_v33  ;;  %v343_v37 = vmul.f32 1.442695, %v340_v34  ;;  %v447_v4 = vld [vmem:[#allocation7 + $0x10] sm:$0xff] }
 0x29c   :  { %v345_v38 = vmul.f32 1.442695, %v341_v35  ;;  %v347_v39 = vmul.f32 1.442695, %v342_v36 }
 0x29e   :  { %566 = vpow2.f32 %v345_v38 }
 0x29f   :  { %568 = vpow2.f32 %v347_v39 }
 0x2a0   :  { %570 = vpow2.f32 %v343_v37 }
 0x2a4   :  { %v767_v40 = vpop.eup %566 }
 0x2a5   :  { %v769_v41 = vpop.eup %568  ;;  %v352_v42 = vrot.slane %v767_v40, 7 }
 0x2a6   :  { %v772_v43 = vpop.eup %570  ;;  %v354_v44 = vrot.slane %v769_v41, 6 }
 0x2a7   :  { %v353_v45 = vsel %vm194_vm10, %v352_v42, %v772_v43 }
 0x2a8   :  { %v355_v46 = vsel %vm327_vm12, %v354_v44, %v353_v45 }
 0x2a9   :  { %v357_v47 = vsel %vm330_vm13, %v355_v46, 0.0  ;;  %vm285_vm13 = vcmask 64512  }
 0x2aa   :  { %358 = vadd.xlane.f32.xlu1 %v357_v47 }
 0x2cf   :  { %v226_v48 = vpop.xlane.xlu2 %225 }
 0x2d0   :  { %v228_v49 = vrot.slane %v226_v48, 1  ;;  %v229_v50 = vrot.slane %v226_v48, 2  ;;  %572 = vrcp.f32 %v226_v48  ;;  %vm238_vm14 = vweird.f32 %v226_v48 }
 0x2d1   :  { %v242_v59 = vand.u32 2147483647, %v226_v48  ;;  %v244_v61 = vand.u32 2147483648, %v226_v48 }
 0x2d2   :  { %574 = vrcp.f32 %v228_v49  ;;  %v257_v62 = vand.u32 2147483647, %v228_v49  ;;  %v259_v63 = vand.u32 2147483648, %v228_v49  ;;  %v274_v3 = vand.u32 2147483648, %v229_v50 }
 0x2d3   :  { %576 = vrcp.f32 %v229_v50  ;;  %v272_v6 = vand.u32 2147483647, %v229_v50  ;;  %vm253_vm4 = vweird.f32 %v228_v49  ;;  %v245_v9 = vor.u32 1.1754944e-38, %v244_v61 }
 0x2d4   :  { %v260_v10 = vor.u32 1.1754944e-38, %v259_v63  ;;  %vm268_vm6 = vweird.f32 %v229_v50  ;;  %vm243_vm7 = vcmp.eq.f32.partialorder %v242_v59, 8.507059e+37  ;;  %vm258_vm8 = vcmp.eq.f32.partialorder %v257_v62, 8.507059e+37 }
 0x2d5   :  { %v275_v13 = vor.u32 1.1754944e-38, %v274_v3  ;;  %vm273_vm12 = vcmp.eq.f32.partialorder %v272_v6, 8.507059e+37  ;;  %v445_v6 = vld [vmem:[#allocation7] sm:$0xff] }
 0x2d6   :  { %v573_v51 = vpop.eup %572 }
 0x2d7   :  { %v234_v52 = vmul.f32 %v573_v51, %v226_v48  ;;  %vm239_vm15 = vweird.f32 %v573_v51 }
 0x2d8   :  { %v575_v53 = vpop.eup %574  ;;  %vm779_vm2 = vmor %vm238_vm14, %vm239_vm15 }
 0x2d9   :  { %v577_v54 = vpop.eup %576  ;;  %v235_v55 = vsub.f32 1.0, %v234_v52  ;;  %v249_v56 = vmul.f32 %v575_v53, %v228_v49  ;;  %vm254_vm1 = vweird.f32 %v575_v53 }
 0x2da   :  { %v264_v57 = vmul.f32 %v577_v54, %v229_v50  ;;  %vm269_vm3 = vweird.f32 %v577_v54  ;;  %vm255_vm5 = vmor %vm253_vm4, %vm254_vm1 }
 0x2db   :  { %v236_v58 = vmul.f32 %v573_v51, %v235_v55  ;;  %v250_v60 = vsub.f32 1.0, %v249_v56  ;;  %vm270_vm11 = vmor %vm268_vm6, %vm269_vm3 }
 0x2dc   :  { %v265_v0 = vsub.f32 1.0, %v264_v57 }
 0x2dd   :  { %v237_v1 = vadd.f32 %v573_v51, %v236_v58  ;;  %v251_v2 = vmul.f32 %v575_v53, %v250_v60 }
 0x2de   :  { %v266_v5 = vmul.f32 %v577_v54, %v265_v0 }
 0x2df   :  { %v241_v7 = vsel %vm779_vm2, %v573_v51, %v237_v1  ;;  %v252_v8 = vadd.f32 %v575_v53, %v251_v2 }
 0x2e0   :  { %v267_v11 = vadd.f32 %v577_v54, %v266_v5  ;;  %v246_v14 = vsel %vm243_vm7, %v245_v9, %v241_v7  ;;  %v446_v5 = vld [vmem:[#allocation7 + $0x8] sm:$0xff]  ;;  %v450_v9 = vld [vmem:[#allocation7 + $0x21] sm:$0x7] }
 0x2e1   :  { %v256_v12 = vsel %vm255_vm5, %v575_v53, %v252_v8  ;;  %v247_v20 = vmul.f32 %v760_v26, %v246_v14 }
 0x2e2   :  { %v261_v15 = vsel %vm258_vm8, %v260_v10, %v256_v12  ;;  %v271_v16 = vsel %vm270_vm11, %v577_v54, %v267_v11  ;;  %v483_v10 = vrot.slane %v450_v9, 5 }
 0x2e3   :  { %v262_v17 = vmul.f32 %v755_v23, %v261_v15  ;;  %v276_v18 = vsel %vm273_vm12, %v275_v13, %v271_v16 }
 0x2e4   :  { %v277_v19 = vmul.f32 %v757_v24, %v276_v18 }
 0x2e5   :  { %v281_v21 = vrot.slane %v262_v17, 7 }
 0x2e6   :  { %v283_v22 = vrot.slane %v277_v19, 6 }
 0x2e7   :  { %v282_v25 = vsel %vm191_vm9, %v281_v21, %v247_v20 }
 0x2e8   :  { %v284_v27 = vsel %vm194_vm10, %v283_v22, %v282_v25 }
 0x2e9   :  { %536 = vmatmul.msk.f32.vlgmr.msra.gmra.mxu1 %vm285_vm13, %v284_v27 }
 0x31d   :  { %v359_v28 = vpop.xlane.xlu1 %358 }
 0x31e   :  { %v361_v29 = vrot.slane %v359_v28, 1  ;;  %v362_v30 = vrot.slane %v359_v28, 2  ;;  %578 = vrcp.f32 %v359_v28  ;;  %v377_v34 = vand.u32 2147483648, %v359_v28 }
 0x31f   :  { %v375_v37 = vand.u32 2147483647, %v359_v28  ;;  %vm371_vm15 = vweird.f32 %v359_v28 }
 0x320   :  { %580 = vrcp.f32 %v361_v29  ;;  %v390_v39 = vand.u32 2147483647, %v361_v29  ;;  %v392_v42 = vand.u32 2147483648, %v361_v29  ;;  %v407_v47 = vand.u32 2147483648, %v362_v30 }
 0x321   :  { %582 = vrcp.f32 %v362_v30  ;;  %v378_v48 = vor.u32 1.1754944e-38, %v377_v34  ;;  %v405_v50 = vand.u32 2147483647, %v362_v30  ;;  %vm376_vm4 = vcmp.eq.f32.partialorder %v375_v37, 8.507059e+37 }
 0x322   :  { %vm386_vm5 = vweird.f32 %v361_v29  ;;  %v393_v54 = vor.u32 1.1754944e-38, %v392_v42  ;;  %vm401_vm7 = vweird.f32 %v362_v30  ;;  %vm391_vm8 = vcmp.eq.f32.partialorder %v390_v39, 8.507059e+37 }
 0x323   :  { %v408_v58 = vor.u32 1.1754944e-38, %v407_v47  ;;  %vm406_vm12 = vcmp.eq.f32.partialorder %v405_v50, 8.507059e+37 }
 0x324   :  { %v579_v23 = vpop.eup %578 }
 0x325   :  { %v367_v31 = vmul.f32 %v579_v23, %v359_v28  ;;  %vm372_vm14 = vweird.f32 %v579_v23 }
 0x326   :  { %v581_v24 = vpop.eup %580  ;;  %vm373_vm2 = vmor %vm371_vm15, %vm372_vm14  ;;  %vm443_vm14 = vcmask 1042432  }
 0x327   :  { %v583_v32 = vpop.eup %582  ;;  %v368_v26 = vsub.f32 1.0, %v367_v31  ;;  %v382_v33 = vmul.f32 %v581_v24, %v361_v29  ;;  %vm387_vm1 = vweird.f32 %v581_v24 }
 0x328   :  { %v397_v35 = vmul.f32 %v583_v32, %v362_v30  ;;  %vm402_vm3 = vweird.f32 %v583_v32  ;;  %vm388_vm6 = vmor %vm386_vm5, %vm387_vm1  ;;  %v553_v30 = vld [vmem:[#allocation7 + $0x20] ss:$0 sm:$0xff] }
 0x329   :  { %v369_v36 = vmul.f32 %v579_v23, %v368_v26  ;;  %v383_v38 = vsub.f32 1.0, %v382_v33  ;;  %vm403_vm11 = vmor %vm401_vm7, %vm402_vm3 }
 0x32a   :  { %v398_v44 = vsub.f32 1.0, %v397_v35  ;;  %v500_v35 = vlaneseq }
 0x32b   :  { %v370_v45 = vadd.f32 %v579_v23, %v369_v36  ;;  %v384_v46 = vmul.f32 %v581_v24, %v383_v38 }
 0x32c   :  { %v399_v49 = vmul.f32 %v583_v32, %v398_v44  ;;  %v501_v37 = vand.u32 127, %v500_v35 }
 0x32d   :  { %v374_v51 = vsel %vm373_vm2, %v579_v23, %v370_v45  ;;  %v385_v52 = vadd.f32 %v581_v24, %v384_v46 }
 0x32e   :  { %v379_v53 = vsel %vm376_vm4, %v378_v48, %v374_v51  ;;  %v400_v55 = vadd.f32 %v583_v32, %v399_v49 }
 0x32f   :  { %v380_v56 = vmul.f32 %v772_v43, %v379_v53  ;;  %v389_v57 = vsel %vm388_vm6, %v581_v24, %v385_v52  ;;  %v448_v43 = vld [vmem:[#allocation7 + $0x18] sm:$0xff] }
 0x330   :  { %v394_v59 = vsel %vm391_vm8, %v393_v54, %v389_v57  ;;  %v404_v60 = vsel %vm403_vm11, %v583_v32, %v400_v55  ;;  %466 = vmatpush.msra.mxu3 %v448_v43 }
 0x331   :  { %v395_v61 = vmul.f32 %v767_v40, %v394_v59  ;;  %v409_v62 = vsel %vm406_vm12, %v408_v58, %v404_v60  ;;  %v414_v63 = vrot.slane %v380_v56, 1 }
 0x332   :  { %v410_v0 = vmul.f32 %v769_v41, %v409_v62  ;;  %467 = vmatpush.msra.mxu3 %v447_v4 }
 0x333   :  { %v415_v1 = vsel %vm191_vm9, %v395_v61, %v414_v63  ;;  %vm496_vm9 = vcmask 1040384  }
 0x334   :  { %v416_v2 = vrot.slane %v410_v0, 7  ;;  %468 = vmatpush.msra.mxu3 %v446_v5 }
 0x336   :  { %v417_v3 = vsel %vm194_vm10, %v416_v2, %v415_v1  ;;  %469 = vmatpush.msra.mxu3 %v445_v6  ;;  %vm503_vm10 = vcmp.lt.s32.totalorder %v501_v37, 10 }
 0x337   :  { %537 = vmatmul.msk.f32.vlgmr.msra.gmra.mxu2 %vm285_vm13, %v417_v3 }
 0x366   :  { %v305_v8 = vpop.f32.mrf.mxu1 }
 0x3ba   :  { %v437_v40 = vpop.f32.mrf.mxu2 }
 0x3bb   :  { %v441_v7 = vrot.slane %v437_v40, 5 }
 0x3bd   :  { %v444_v41 = vsel %vm443_vm14, %v305_v8, %v441_v7 }
 0x3be   :  { %538 = vmatmul.msk.f32.vlgmr.msra.gmra.mxu3 %vm83_vm0, %v444_v41  ;;  %vm502_vm0 = vcmp.ge.s32.totalorder %v501_v37, 4 }
 0x3bf   :  { %vm504_vm15 = vmand %vm502_vm0, %vm503_vm10 }
 0x441   :  { %v471_v11 = vpop.f32.mrf.mxu3 }
 0x442   :  { %v474_v12 = vmul.f32 %v471_v11, %v450_v9  ;;  %v485_v13 = vmul.f32 %v483_v10, %v471_v11 }
 0x444   :  { %v475_v14 = vsel %vm443_vm14, %v474_v12, 0.0  ;;  %v487_v15 = vrot.slane %v485_v13, 3 }
 0x445   :  { %v476_v16 = vrot.slane %v475_v14, 4 }
 0x446   :  { %v489_v17 = vsel %vm443_vm14, %v487_v15, 0.0 }
 0x447   :  { %v477_v18 = vadd.f32 %v476_v16, %v475_v14  ;;  %v490_v19 = vrot.slane %v489_v17, 4 }
 0x449   :  { %v478_v20 = vrot.slane %v477_v18, 2  ;;  %v491_v21 = vadd.f32 %v490_v19, %v489_v17 }
 0x44b   :  { %v479_v22 = vadd.f32 %v478_v20, %v477_v18  ;;  %v492_v25 = vrot.slane %v491_v21, 2 }
 0x44d   :  { %v480_v27 = vrot.slane %v479_v22, 1  ;;  %v493_v28 = vadd.f32 %v492_v25, %v491_v21 }
 0x44f   :  { %v494_v29 = vrot.slane %v493_v28, 1  ;;  %v481_v23 = vadd.f32 %v480_v27, %v479_v22 }
 0x451   :  { %v495_v31 = vadd.f32 %v494_v29, %v493_v28 }
 0x453   :  { %v497_v24 = vsel %vm496_vm9, %v481_v23, %v495_v31 }
 0x454   :  { %v499_v32 = vadd.f32 %v553_v30, %v497_v24 }
 0x456   :  { %v539_v26 = vmul.f32 -1.442695, %v499_v32 }
 0x458   :  { %584 = vpow2.f32 %v539_v26 }
 0x45e   :  { %v585_v33 = vpop.eup %584 }
 0x45f   :  { %v508_v34 = vadd.f32 1.0, %v585_v33 }
 0x461   :  { %586 = vrcp.f32 %v508_v34  ;;  %v520_v42 = vand.u32 2147483648, %v508_v34  ;;  %v518_v45 = vand.u32 2147483647, %v508_v34  ;;  %vm514_vm1 = vweird.f32 %v508_v34 }
 0x463   :  { %v521_v47 = vor.u32 1.1754944e-38, %v520_v42  ;;  %vm519_vm3 = vcmp.eq.f32.partialorder %v518_v45, 8.507059e+37 }
 0x467   :  { %v587_v36 = vpop.eup %586 }
 0x468   :  { %v510_v38 = vmul.f32 %v587_v36, %v508_v34  ;;  %vm515_vm13 = vweird.f32 %v587_v36 }
 0x469   :  { %vm516_vm2 = vmor %vm514_vm1, %vm515_vm13 }
 0x46a   :  { %v511_v39 = vsub.f32 1.0, %v510_v38 }
 0x46c   :  { %v512_v44 = vmul.f32 %v587_v36, %v511_v39 }
 0x46e   :  { %v513_v46 = vadd.f32 %v587_v36, %v512_v44 }
 0x470   :  { %v517_v48 = vsel %vm516_vm2, %v587_v36, %v513_v46 }
 0x471   :  { %v522_v49 = vsel %vm519_vm3, %v521_v47, %v517_v48 }
 0x472   :  { %v524_v50 = vsel %vm504_vm15, %v522_v49, %v499_v32 }
 0x473   :  { %525 = vst [vmem:[%s805_s4] sm:$0x3] %v524_v50 }
 0x474   :  { %530 = vsyncpa [#allocation3], 1 }
 0x475   :  { %531 = vsyncpa [#allocation5], 1 }
 0x476   :  { %532 = vsyncpa [#allocation8], 1 }

</bundles_post_ra>
